<compile_context>
chip_gen: v7x
topology: tpu7x:2x2x1
jax: 0.10.0
libtpu: 0.0.40
codegen_flags: <defaults>
</compile_context>

<pallas_src>
import functools

import jax
import jax.numpy as jnp
from jax.experimental import pallas as pl
from jax.experimental.pallas import tpu as pltpu


# ----------------------------- fused block kernel ---------------------------- #

def _fused_block_kernel(*refs, L, kmax, has_bottleneck, has_shortcut):
    it = iter(refs)
    x_ref = next(it)                                    # (L, Cin)   f32
    wb_ref = next(it) if has_bottleneck else None       # (Cin, B)   bf16
    wbr_ref = next(it)                                  # (Kmax*Bin, n_kss*F) bf16
    wcb_ref = next(it)                                  # (Cin, F)   bf16
    scale_ref = next(it)                                # (1, out_ch) f32
    shift_ref = next(it)                                # (1, out_ch) f32
    if has_shortcut:
        res_ref = next(it)                              # (L, Cin_res) f32
        wsc_ref = next(it)                              # (Cin_res, out_ch) bf16
        sc_scale_ref = next(it)                         # (1, out_ch) f32
        sc_shift_ref = next(it)                         # (1, out_ch) f32
    o_ref = next(it)                                    # (L, out_ch) f32

    maxpad = (kmax - 1) // 2
    x = x_ref[...]                                      # (L, Cin) f32

    # ---- bottleneck 1x1 conv (bf16 MXU, f32 accumulate) ----
    if has_bottleneck:
        bottled = jnp.dot(x.astype(jnp.bfloat16), wb_ref[...],
                          preferred_element_type=jnp.float32)     # (L, B) f32
    else:
        bottled = x

    # ---- all K-branch convs in ONE lane-dense matmul ----
    # Zero-pad the bottleneck output in VMEM, build the (L, Kmax*Bin) shifted-tap LHS,
    # contract against the merged (zero-padded, Cout-concatenated) branch weights.
    bin_ = bottled.shape[1]
    if maxpad > 0:
        zpad = jnp.zeros((maxpad, bin_), jnp.float32)
        bp = jnp.concatenate([zpad, bottled, zpad], axis=0)        # (L+2*maxpad, Bin)
    else:
        bp = bottled
    lhs = jnp.concatenate([bp[k:k + L, :] for k in range(kmax)], axis=1)
    branch_out = jnp.dot(lhs.astype(jnp.bfloat16), wbr_ref[...],
                         preferred_element_type=jnp.float32)       # (L, n_kss*F)

    # ---- maxpool(3, stride 1, pad 1) -> 1x1 conv branch ----
    cin = x.shape[1]
    ninf = jnp.full((1, cin), -jnp.inf, jnp.float32)
    xp = jnp.concatenate([ninf, x, ninf], axis=0)                   # (L+2, Cin)
    pooled = jnp.maximum(jnp.maximum(xp[0:L, :], xp[1:L + 1, :]), xp[2:L + 2, :])
    cb_out = jnp.dot(pooled.astype(jnp.bfloat16), wcb_ref[...],
                     preferred_element_type=jnp.float32)            # (L, F)

    # ---- channel concat + BN + ReLU (f32 VPU epilogue) ----
    cat = jnp.concatenate([branch_out, cb_out], axis=1)             # (L, out_ch)
    y = jnp.maximum(cat * scale_ref[...] + shift_ref[...], 0.0)

    # ---- fused Shortcut1d: relu(y + bn(conv1x1(residual))) ----
    if has_shortcut:
        s = jnp.dot(res_ref[...].astype(jnp.bfloat16), wsc_ref[...],
                    preferred_element_type=jnp.float32)
        y = jnp.maximum(y + s * sc_scale_ref[...] + sc_shift_ref[...], 0.0)

    o_ref[...] = y.astype(o_ref.dtype)


def inception_block(x, p, kss, res=None, sc=None):
    """One fused InceptionBlock1d (optionally with its trailing Shortcut1d)."""
    N, L, Cin = x.shape
    kmax = max(kss)
    has_b = p['w_bottleneck'] is not None
    has_s = res is not None
    out_ch = p['bn_scale'].shape[-1]

    inputs = [x]
    in_specs = [pl.BlockSpec((None, L, Cin), lambda n: (n, 0, 0))]
    if has_b:
        wb = p['w_bottleneck']
        inputs.append(wb)
        in_specs.append(pl.BlockSpec(wb.shape, lambda n: (0, 0)))
    wbr = p['w_branches_merged']
    inputs.append(wbr)
    in_specs.append(pl.BlockSpec(wbr.shape, lambda n: (0, 0)))
    wcb = p['w_conv_bottle']
    inputs.append(wcb)
    in_specs.append(pl.BlockSpec(wcb.shape, lambda n: (0, 0)))
    inputs += [p['bn_scale'], p['bn_shift']]
    in_specs += [pl.BlockSpec((1, out_ch), lambda n: (0, 0)),
                 pl.BlockSpec((1, out_ch), lambda n: (0, 0))]
    if has_s:
        Cr = res.shape[-1]
        inputs.append(res)
        in_specs.append(pl.BlockSpec((None, L, Cr), lambda n: (n, 0, 0)))
        inputs += [sc['w_conv'], sc['bn_scale'], sc['bn_shift']]
        in_specs += [pl.BlockSpec(sc['w_conv'].shape, lambda n: (0, 0)),
                     pl.BlockSpec((1, out_ch), lambda n: (0, 0)),
                     pl.BlockSpec((1, out_ch), lambda n: (0, 0))]

    kernel = functools.partial(_fused_block_kernel, L=L, kmax=kmax,
                               has_bottleneck=has_b, has_shortcut=has_s)
    # TODO(synk): at real model sizes (long L), tile L with a (kmax-1)//2 halo and
    # re-budget VMEM for v7x's 64 MiB; whole-sequence blocks are fine at these shapes.
    return pl.pallas_call(
        kernel,
        out_shape=jax.ShapeDtypeStruct((N, L, out_ch), jnp.float32),
        grid=(N,),
        in_specs=in_specs,
        out_specs=pl.BlockSpec((None, L, out_ch), lambda n: (n, 0, 0)),
        compiler_params=pltpu.CompilerParams(
            dimension_semantics=("parallel",),
            vmem_limit_bytes=48 * 1024 * 1024),
    )(*inputs)


def inception_backbone(x, params, depth, use_residual, kss):
    input_res = x
    for d in range(depth):
        blk = params['blocks'][d]
        if use_residual and d % 3 == 2:
            x = inception_block(x, blk, kss,
                                res=input_res, sc=params['shortcuts'][d // 3])
            input_res = x
        else:
            x = inception_block(x, blk, kss)
    return x


# ------------------------------ parameters ----------------------------------- #

def _conv_w(key, k, cin, cout):
    # PyTorch Conv1d weight is (cout, cin, k); we store (k, cin, cout)
    return 0.1 * jax.random.normal(key, (k, cin, cout), jnp.float32)


def _bn_params(key, c, eps=1e-5):
    k1, k2, k3 = jax.random.split(key, 3)
    gamma = 1.0 + 0.1 * jax.random.normal(k1, (c,), jnp.float32)
    beta = 0.1 * jax.random.normal(k2, (c,), jnp.float32)
    mean = 0.1 * jax.random.normal(k3, (c,), jnp.float32)
    var = jnp.ones((c,), jnp.float32)
    scale = gamma / jnp.sqrt(var + eps)
    shift = beta - mean * scale
    return scale.reshape(1, c), shift.reshape(1, c)


def _merge_branch_weights(conv_ws, kmax):
    """Zero-pad each (k, Bin, F) weight to kmax taps (centered), concat along Cout,
    reshape to the (kmax*Bin, n_branches*F) matrix consumed by the fused kernel."""
    mats = []
    for w in conv_ws:
        k = w.shape[0]
        off = (kmax - k) // 2
        mats.append(jnp.pad(w, ((off, kmax - k - off), (0, 0), (0, 0))))
    merged = jnp.concatenate(mats, axis=-1)            # (kmax, Bin, n_kss*F)
    return merged.reshape(merged.shape[0] * merged.shape[1], merged.shape[2])


def init_params(key, input_channels, kss, depth, bottleneck_size, nb_filters):
    n_ks = len(kss) + 1
    out_ch = n_ks * nb_filters
    kmax = max(kss)
    blocks, shortcuts = [], []
    keys = jax.random.split(key, depth + max(depth // 3, 1))
    for d in range(depth):
        ni = input_channels if d == 0 else out_ch
        bneck_in = bottleneck_size if bottleneck_size > 0 else ni
        kb = jax.random.split(keys[d], len(kss) + 3)
        wbott = _conv_w(kb[0], 1, ni, bottleneck_size) if bottleneck_size > 0 else None
        conv_ws = [_conv_w(kb[1 + i], kss[i], bneck_in, nb_filters)
                   for i in range(len(kss))]
        wcb = _conv_w(kb[1 + len(kss)], 1, ni, nb_filters)
        scale, shift = _bn_params(kb[2 + len(kss)], out_ch)
        blocks.append({
            # kernel-form weights (bf16 MXU operands)
            'w_bottleneck': None if wbott is None else wbott[0].astype(jnp.bfloat16),
            'w_branches_merged': _merge_branch_weights(conv_ws, kmax).astype(jnp.bfloat16),
            'w_conv_bottle': wcb[0].astype(jnp.bfloat16),
            'bn_scale': scale, 'bn_shift': shift,
            # reference-form (WIO) copies of the same bf16 weights
            'ref_bottleneck_w': None if wbott is None else wbott.astype(jnp.bfloat16),
            'ref_conv_ws': [w.astype(jnp.bfloat16) for w in conv_ws],
            'ref_conv_bottle_w': wcb.astype(jnp.bfloat16),
        })
    for s in range(depth // 3):
        ni = input_channels if s == 0 else out_ch
        k1, k2 = jax.random.split(keys[depth + s])
        wsc = _conv_w(k1, 1, ni, out_ch)
        scale, shift = _bn_params(k2, out_ch)
        shortcuts.append({
            'w_conv': wsc[0].astype(jnp.bfloat16),
            'bn_scale': scale, 'bn_shift': shift,
            'ref_conv_w': wsc.astype(jnp.bfloat16),
        })
    return {'blocks': blocks, 'shortcuts': shortcuts}


# ------------------------- pure-JAX reference (check) ------------------------ #

def _ref_conv1d(x, w):
    pad = (w.shape[0] - 1) // 2
    return jax.lax.conv_general_dilated(
        x.astype(jnp.bfloat16), w, (1,), [(pad, pad)],
        dimension_numbers=('NWC', 'WIO', 'NWC'),
        preferred_element_type=jnp.float32)


def _ref_maxpool3(x):
    return jax.lax.reduce_window(x, -jnp.inf, jax.lax.max,
                                 (1, 3, 1), (1, 1, 1), [(0, 0), (1, 1), (0, 0)])


def _ref_block(x, p):
    bottled = (_ref_conv1d(x, p['ref_bottleneck_w'])
               if p['ref_bottleneck_w'] is not None else x)
    branches = [_ref_conv1d(bottled, w) for w in p['ref_conv_ws']]
    branches.append(_ref_conv1d(_ref_maxpool3(x), p['ref_conv_bottle_w']))
    cat = jnp.concatenate(branches, axis=-1)
    return jnp.maximum(cat * p['bn_scale'] + p['bn_shift'], 0.0)


def _ref_backbone(x, params, depth, use_residual):
    input_res = x
    for d in range(depth):
        x = _ref_block(x, params['blocks'][d])
        if use_residual and d % 3 == 2:
            p = params['shortcuts'][d // 3]
            x = jnp.maximum(x + _ref_conv1d(input_res, p['ref_conv_w']) * p['bn_scale']
                            + p['bn_shift'], 0.0)
            input_res = x
    return x


# ---------------------------------- main ------------------------------------- #

if __name__ == "__main__":
    key = jax.random.PRNGKey(0)
    kx, kp = jax.random.split(key)

    # Small shapes consistent with the module (PyTorch would see x as (N, C_in, L)).
    N, C_in, L = 2, 4, 16
    kss = (5, 3)
    depth, bottleneck_size, nb_filters = 3, 8, 8
    use_residual = True
    n_ks = len(kss) + 1

    x = jax.random.normal(kx, (N, L, C_in), jnp.float32)   # (N, L, C) layout
    params = init_params(kp, C_in, kss, depth, bottleneck_size, nb_filters)

    out = inception_backbone(x, params, depth, use_residual, kss)
    out = jax.block_until_ready(out)

    assert out.shape == (N, L, n_ks * nb_filters), out.shape

    ref = _ref_backbone(x, params, depth, use_residual)
    max_err = float(jnp.max(jnp.abs(out - ref)))
    # bf16 MXU operands -> looser tolerance than a pure-f32 pipeline.
    assert jnp.allclose(out, ref, atol=2e-2, rtol=2e-2), max_err

    print("KERNEL_OK")
</pallas_src>

<mosaic_0001>
module attributes {stable_mosaic.version = 11 : i64} {
  func.func @_fused_block_kernel(%arg0: i32, %arg1: memref<1x16x4xf32, #tpu.memory_space<vmem>>, %arg2: memref<4x8xbf16, #tpu.memory_space<vmem>>, %arg3: memref<40x16xbf16, #tpu.memory_space<vmem>>, %arg4: memref<4x8xbf16, #tpu.memory_space<vmem>>, %arg5: memref<1x24xf32, #tpu.memory_space<vmem>>, %arg6: memref<1x24xf32, #tpu.memory_space<vmem>>, %arg7: memref<1x16x24xf32, #tpu.memory_space<vmem>>) attributes {dimension_semantics = [#tpu.dimension_semantics<parallel>], iteration_bounds = array<i64: 2>, scalar_prefetch = 0 : i64, scratch_operands = 0 : i64, tpu.core_type = #tpu.core_type<tc>, window_params = [{transform_indices = @transform_0, window_bounds = array<i64: 1, 16, 4>}, {pipeline_mode = #tpu.pipeline_mode<synchronous>, transform_indices = @transform_1, window_bounds = array<i64: 4, 8>}, {pipeline_mode = #tpu.pipeline_mode<synchronous>, transform_indices = @transform_2, window_bounds = array<i64: 40, 16>}, {pipeline_mode = #tpu.pipeline_mode<synchronous>, transform_indices = @transform_3, window_bounds = array<i64: 4, 8>}, {pipeline_mode = #tpu.pipeline_mode<synchronous>, transform_indices = @transform_4, window_bounds = array<i64: 1, 24>}, {pipeline_mode = #tpu.pipeline_mode<synchronous>, transform_indices = @transform_5, window_bounds = array<i64: 1, 24>}, {transform_indices = @transform_6, window_bounds = array<i64: 1, 16, 24>}]} {
    %c0 = arith.constant 0 : index
    %c0_0 = arith.constant 0 : index
    %c0_1 = arith.constant 0 : index
    %0 = vector.load %arg1[%c0, %c0_0, %c0_1] : memref<1x16x4xf32, #tpu.memory_space<vmem>>, vector<1x16x4xf32>
    %1 = vector.shape_cast %0 : vector<1x16x4xf32> to vector<16x4xf32>
    %2 = arith.truncf %1 : vector<16x4xf32> to vector<16x4xbf16>
    %c0_2 = arith.constant 0 : index
    %c0_3 = arith.constant 0 : index
    %3 = vector.load %arg2[%c0_2, %c0_3] : memref<4x8xbf16, #tpu.memory_space<vmem>>, vector<4x8xbf16>
    %cst = arith.constant dense<0.000000e+00> : vector<16x8xf32>
    %4 = tpu.matmul %2, %3, %cst {dimension_numbers = #tpu.dot_dimension_numbers<[1], [0], [0], [1], [0, 0, 1, 1], [], []>} : vector<16x4xbf16>, vector<4x8xbf16>, vector<16x8xf32> -> vector<16x8xf32>
    %cst_4 = arith.constant 0.000000e+00 : f32
    %5 = vector.broadcast %cst_4 : f32 to vector<2x8xf32>
    %6 = tpu.concatenate %5, %4, %5 in 0 : vector<2x8xf32>, vector<16x8xf32>, vector<2x8xf32> -> vector<20x8xf32>
    %7 = vector.extract_strided_slice %6 {offsets = [0, 0], sizes = [16, 8], strides = [1, 1]} : vector<20x8xf32> to vector<16x8xf32>
    %8 = vector.extract_strided_slice %6 {offsets = [1, 0], sizes = [16, 8], strides = [1, 1]} : vector<20x8xf32> to vector<16x8xf32>
    %9 = vector.extract_strided_slice %6 {offsets = [2, 0], sizes = [16, 8], strides = [1, 1]} : vector<20x8xf32> to vector<16x8xf32>
    %10 = vector.extract_strided_slice %6 {offsets = [3, 0], sizes = [16, 8], strides = [1, 1]} : vector<20x8xf32> to vector<16x8xf32>
    %11 = vector.extract_strided_slice %6 {offsets = [4, 0], sizes = [16, 8], strides = [1, 1]} : vector<20x8xf32> to vector<16x8xf32>
    %12 = tpu.concatenate %7, %8, %9, %10, %11 in 1 : vector<16x8xf32>, vector<16x8xf32>, vector<16x8xf32>, vector<16x8xf32>, vector<16x8xf32> -> vector<16x40xf32>
    %13 = arith.truncf %12 : vector<16x40xf32> to vector<16x40xbf16>
    %c0_5 = arith.constant 0 : index
    %c0_6 = arith.constant 0 : index
    %14 = vector.load %arg3[%c0_5, %c0_6] : memref<40x16xbf16, #tpu.memory_space<vmem>>, vector<40x16xbf16>
    %cst_7 = arith.constant dense<0.000000e+00> : vector<16x16xf32>
    %15 = tpu.matmul %13, %14, %cst_7 {dimension_numbers = #tpu.dot_dimension_numbers<[1], [0], [0], [1], [0, 0, 1, 1], [], []>} : vector<16x40xbf16>, vector<40x16xbf16>, vector<16x16xf32> -> vector<16x16xf32>
    %cst_8 = arith.constant 0xFF800000 : f32
    %16 = vector.broadcast %cst_8 : f32 to vector<1x4xf32>
    %17 = tpu.concatenate %16, %1, %16 in 0 : vector<1x4xf32>, vector<16x4xf32>, vector<1x4xf32> -> vector<18x4xf32>
    %18 = vector.extract_strided_slice %17 {offsets = [0, 0], sizes = [16, 4], strides = [1, 1]} : vector<18x4xf32> to vector<16x4xf32>
    %19 = vector.extract_strided_slice %17 {offsets = [1, 0], sizes = [16, 4], strides = [1, 1]} : vector<18x4xf32> to vector<16x4xf32>
    %20 = arith.maximumf %18, %19 : vector<16x4xf32>
    %21 = vector.extract_strided_slice %17 {offsets = [2, 0], sizes = [16, 4], strides = [1, 1]} : vector<18x4xf32> to vector<16x4xf32>
    %22 = arith.maximumf %20, %21 : vector<16x4xf32>
    %23 = arith.truncf %22 : vector<16x4xf32> to vector<16x4xbf16>
    %c0_9 = arith.constant 0 : index
    %c0_10 = arith.constant 0 : index
    %24 = vector.load %arg4[%c0_9, %c0_10] : memref<4x8xbf16, #tpu.memory_space<vmem>>, vector<4x8xbf16>
    %cst_11 = arith.constant dense<0.000000e+00> : vector<16x8xf32>
    %25 = tpu.matmul %23, %24, %cst_11 {dimension_numbers = #tpu.dot_dimension_numbers<[1], [0], [0], [1], [0, 0, 1, 1], [], []>} : vector<16x4xbf16>, vector<4x8xbf16>, vector<16x8xf32> -> vector<16x8xf32>
    %26 = tpu.concatenate %15, %25 in 1 : vector<16x16xf32>, vector<16x8xf32> -> vector<16x24xf32>
    %c0_12 = arith.constant 0 : index
    %c0_13 = arith.constant 0 : index
    %27 = vector.load %arg5[%c0_12, %c0_13] : memref<1x24xf32, #tpu.memory_space<vmem>>, vector<1x24xf32>
    %28 = vector.broadcast %27 : vector<1x24xf32> to vector<16x24xf32>
    %29 = arith.mulf %26, %28 : vector<16x24xf32>
    %c0_14 = arith.constant 0 : index
    %c0_15 = arith.constant 0 : index
    %30 = vector.load %arg6[%c0_14, %c0_15] : memref<1x24xf32, #tpu.memory_space<vmem>>, vector<1x24xf32>
    %31 = vector.broadcast %30 : vector<1x24xf32> to vector<16x24xf32>
    %32 = arith.addf %29, %31 : vector<16x24xf32>
    %cst_16 = arith.constant 0.000000e+00 : f32
    %33 = vector.broadcast %cst_16 : f32 to vector<16x24xf32>
    %34 = arith.maximumf %32, %33 : vector<16x24xf32>
    %c0_17 = arith.constant 0 : index
    %c0_18 = arith.constant 0 : index
    %c0_19 = arith.constant 0 : index
    %35 = vector.load %arg7[%c0_17, %c0_18, %c0_19] : memref<1x16x24xf32, #tpu.memory_space<vmem>>, vector<1x16x24xf32>
    %36 = vector.shape_cast %35 : vector<1x16x24xf32> to vector<16x24xf32>
    %37 = vector.shape_cast %34 : vector<16x24xf32> to vector<1x16x24xf32>
    tpu.vector_store %arg7[%c0_17, %c0_18, %c0_19], %37 {strides = array<i32>} : memref<1x16x24xf32, #tpu.memory_space<vmem>>, vector<1x16x24xf32>,
    return
  }
  func.func @transform_0(%arg0: i32) -> (i32, i32, i32) {
    %c0_i32 = arith.constant 0 : i32
    %c0_i32_0 = arith.constant 0 : i32
    %c0_i32_1 = arith.constant 0 : i32
    return %arg0, %c0_i32, %c0_i32_0 : i32, i32, i32
  }
  func.func @transform_1(%arg0: i32) -> (i32, i32) {
    %c0_i32 = arith.constant 0 : i32
    %c0_i32_0 = arith.constant 0 : i32
    %c0_i32_1 = arith.constant 0 : i32
    return %c0_i32, %c0_i32_0 : i32, i32
  }
  func.func @transform_2(%arg0: i32) -> (i32, i32) {
    %c0_i32 = arith.constant 0 : i32
    %c0_i32_0 = arith.constant 0 : i32
    %c0_i32_1 = arith.constant 0 : i32
    return %c0_i32, %c0_i32_0 : i32, i32
  }
  func.func @transform_3(%arg0: i32) -> (i32, i32) {
    %c0_i32 = arith.constant 0 : i32
    %c0_i32_0 = arith.constant 0 : i32
    %c0_i32_1 = arith.constant 0 : i32
    return %c0_i32, %c0_i32_0 : i32, i32
  }
  func.func @transform_4(%arg0: i32) -> (i32, i32) {
    %c0_i32 = arith.constant 0 : i32
    %c0_i32_0 = arith.constant 0 : i32
    %c0_i32_1 = arith.constant 0 : i32
    return %c0_i32, %c0_i32_0 : i32, i32
  }
  func.func @transform_5(%arg0: i32) -> (i32, i32) {
    %c0_i32 = arith.constant 0 : i32
    %c0_i32_0 = arith.constant 0 : i32
    %c0_i32_1 = arith.constant 0 : i32
    return %c0_i32, %c0_i32_0 : i32, i32
  }
  func.func @transform_6(%arg0: i32) -> (i32, i32, i32) {
    %c0_i32 = arith.constant 0 : i32
    %c0_i32_0 = arith.constant 0 : i32
    %c0_i32_1 = arith.constant 0 : i32
    return %arg0, %c0_i32, %c0_i32_0 : i32, i32, i32
  }
}

</mosaic_0001>

<bundles_post_ra>
// kernel: tpu_custom_call.1
= control target key start
LH: loop header
LB: loop body
LE: loop exit
PB: predicated region body
PF: predicated region fallthrough
CT: control target
= control target key end

     0   :  { %11 = vsyncpa [#allocation3], 0  ;;  %s1030_s0 = inlined_call_operand.vmem [shape: f32[2,16,4], index: 0, kind: input, shape index: {}]   ;;  %s1031_s1 = inlined_call_operand.vmem [shape: bf16[4,8], index: 1, kind: input, shape index: {}]   ;;  %s1032_s2 = inlined_call_operand.vmem [shape: bf16[40,16], index: 2, kind: input, shape index: {}]   ;;  %s1033_s3 = inlined_call_operand.vmem [shape: bf16[4,8], index: 3, kind: input, shape index: {}]   ;;  %s1034_s4 = inlined_call_operand.vmem [shape: f32[1,24], index: 4, kind: input, shape index: {}]   ;;  %s1035_s5 = inlined_call_operand.vmem [shape: f32[1,24], index: 5, kind: input, shape index: {}]   ;;  %s1036_s6 = inlined_call_operand.hbm [shape: f32[2,16,24], index: 6, kind: output, shape index: {}]  }
   0x1   :  { %13 = vsyncpa [#allocation3 + $0x1], 0  ;;  %s861_s21 = smov 0   ;;  %s863_s22 = smov 0  }
   0x2   :  { %s865_s23 = smov 0   ;;  %s867_s24 = smov 0  }
   0x3 LB: > { %s882_s25 = sadd.s32 4294967295, %s816_s24   ;;  %s633_s26 = sadd.s32 4294967294, %s816_s24   ;;  %s816_s24 = sphi %s867_s24, %s1042_s24   ;;  %s812_s23 = sphi %s865_s23, %s1041_s23   ;;  %s808_s22 = sphi %s863_s22, %s1040_s22   ;;  %s804_s21 = sphi %s861_s21, %s1039_s21  }
   0x4   : > { %s886_s27 = sadd.s32 1, %s816_s24   ;;  %s157_s28 = sadd.s32 1, %s812_s23 }
   0x5   : > { %s154_s29 = ssub.s32 %s816_s24, %s886_s27  ;;  %p167_p0 = scmp.ne.s32.totalorder %s812_s23, %s808_s22 }
   0x6   : > { %p155_p1 = scmp.eq.s32.totalorder %s154_s29, 0  ;;  %p168_p2 = scmp.eq.s32.totalorder %s882_s25, 1 }
   0x7   : > { %p173_p3 = scmp.ne.s32.totalorder %s808_s22, %s804_s21  ;;  %p174_p4 = scmp.eq.s32.totalorder %s633_s26, 1 }
   0x8   : > { %s897_s30 = scalar_select %p155_p1, %s812_s23, %s157_s28  }
   0x9   : > { %p899_p5 = por %p168_p2, %p167_p0  ;;  %p903_p6 = por %p174_p4, %p173_p3 }
   0xa   : > { %p636_p7 = scmp.ge.s32.totalorder %s816_s24, 1  ;;  %p215_p8 = scmp.lt.s32.totalorder %s816_s24, 3 }
   0xc   : > { %p216_p9 = pnand %p636_p7, %p215_p8 }
   0xd   : > { %v254_v0 = vld [vmem:[%s1031_s1] sm:$0x3] (!%p216_p9)  ;;  %vm259_vm0 = vcmask (!%p216_p9), 1041408   ;;  %p245_p10 = scmp.lt.s32.totalorder (!%p216_p9), %s882_s25, 1  ;;  %v818_v1 = vmov (!%p216_p9), 0.0   ;;  %vm819_vm1 = vmmov (!%p216_p9), 0  }
   0xe   : > { %219 = sbr.rel (%p216_p9) target bundleno = 613 (0x265), region = 44  ;;  %663 = vmatprep.subr.bf16.mxu0 (!%p216_p9), %v818_v1  ;;  %v261_v2 = vsel (!%p216_p9), %vm259_vm0, %v254_v0, 0  ;;  %665 = vmatprep.mubr.msk.bf16.mxu0 (!%p216_p9), %vm819_vm1, %v818_v1  ;;  %vm255_vm2 = vcmask (!%p216_p9), 31744   ;;  %vm447_vm3 = vcmask (!%p216_p9), 1040384   ;;  %vm316_vm4 = vcmask (!%p216_p9), 1046528   ;;  %v751_v28 = vld [vmem:[%s1032_s2] sm:$0xff] (!%p216_p9)  }
   0xf   : > { %664 = vmatpush3.bf16.msra.mxu0 (!%p216_p9), %v261_v2  ;;  %669 = vmatprep.subr.bf16.mxu1 (!%p216_p9), %v818_v1  ;;  %v477_v17 = vld [vmem:[%s1033_s3] sm:$0x3] (!%p216_p9)  ;;  %vm328_vm5 = vcmask (!%p216_p9), 1045504   ;;  %v752_v36 = vld [vmem:[%s1032_s2 + $0x8] sm:$0xff] (!%p216_p9)   ;;  %vm340_vm6 = vcmask (!%p216_p9), 1044480   ;;  %vm352_vm7 = vcmask (!%p216_p9), 1043456  }
  0x10   : > { %679 = vmatprep.subr.bf16.mxu0 (!%p216_p9), %v818_v1  ;;  %675 = vmatprep.mubr.msk.bf16.mxu1 (!%p216_p9), %vm819_vm1, %v818_v1  ;;  %v482_v20 = vsel (!%p216_p9), %vm259_vm0, %v477_v17, 0  ;;  %v753_v45 = vld [vmem:[%s1032_s2 + $0x10] ss:$0 sps:$4 sm:$0xff] (!%p216_p9)   ;;  %s820_s9 = smov (!%p216_p9), 24   ;;  %s821_s10 = smov (!%p216_p9), 8   ;;  %vm364_vm8 = vcmask (!%p216_p9), 64512  }
  0x11   : > { %670 = vmatpush3.bf16.msra.mxu1 (!%p216_p9), %v751_v28  ;;  %v402_v52 = vsel (!%p216_p9), %vm352_vm7, %v753_v45, 0  ;;  %vm367_vm9 = vcmask (!%p216_p9), 130048   ;;  %vm370_vm10 = vcmask (!%p216_p9), 195584   ;;  %vm373_vm11 = vcmask (!%p216_p9), 261120   ;;  %s242_s13 = sand.u32 (!%p216_p9), 1, %s808_s22   ;;  %s654_s19 = sshll.u32 (!%p216_p9), %s882_s25, 8 }
  0x12   : > { %671 = vmatprep.subr.bf16.mxu1 (!%p216_p9), %v818_v1  ;;  %vm397_vm12 = vcmask (!%p216_p9), 326656   ;;  %s637_s16 = sshll.u32 (!%p216_p9), %s242_s13, 4 }
  0x13   : > { %s244_s20 = scalar_lea.vmem (!%p216_p9), [#allocation2], %s637_s16 }
  0x14   : > { %s571_s26 = sshll.u32 (!%p216_p9), %s244_s20, 4  ;;  %s985_s26 = int_to_ptr.vmem [resolvable:$true] %s571_s26 }
  0x15   : > { %s246_s11 = scalar_select %p245_p10, %s882_s25, 1  ;;  %672 = vmatpush3.bf16.msra.mxu1 %v752_v36 }
  0x16   : > { %673 = vmatprep.subr.bf16.mxu1 %v818_v1  ;;  %s988_s25 = scalar_lea.sflag [#allocation3], %s242_s13 }
  0x17   : > { %s653_s12 = sshll.u32 %s246_s11, 4  ;;  %s822_s11 = smov 32  }
  0x18   : > { %s249_s15 = scalar_lea.vmem %s1030_s0, %s653_s12  ;;  %s823_s12 = smov 16  }
  0x19   : > { %v251_v3 = vld [vmem:[%s249_s15] sm:$0xff]  ;;  %v252_v4 = vld [vmem:[%s249_s15 + $0x8] sm:$0xff]  ;;  %674 = vmatpush3.bf16.msra.mxu1 %v402_v52 }
  0x1a   : > { %v253_v5 = vpack.c.bf16 %v252_v4, %v251_v3  ;;  %v448_v6 = vrot.slane %v251_v3, 7  ;;  %v449_v7 = vrot.slane %v252_v4, 7 }
  0x1c   : > { %666 = vmatmul.mubr.msk.bf16.vlgmr.msra.gmra.mrb[0].mxu0 %vm255_vm2, %v253_v5  ;;  %v454_v8 = vsel %vm447_vm3, -inf, %v448_v6  ;;  %v455_v9 = vsel %vm447_vm3, %v449_v7, -inf  ;;  %v450_v12 = vsel %vm447_vm3, %v448_v6, %v449_v7 }
  0x1d   : > { %681 = vmatprep.mubr.msk.bf16.mxu0 %vm819_vm1, %v818_v1  ;;  %v458_v10 = vrot.slane %v454_v8, 1  ;;  %v461_v11 = vrot.slane %v455_v9, 1  ;;  %v459_v13 = vrot.slane %v450_v12, 1  ;;  %v467_v14 = vrot.slane %v454_v8, 2  ;;  %680 = vmatpush3.bf16.msra.mxu0 %v482_v20 }
  0x1e   : > { %v470_v15 = vrot.slane %v455_v9, 2  ;;  %v468_v16 = vrot.slane %v450_v12, 2 }
  0x1f   : > { %v460_v18 = vsel %vm316_vm4, %v458_v10, %v459_v13  ;;  %v462_v19 = vsel %vm316_vm4, %v459_v13, %v461_v11 }
  0x20   : > { %v465_v21 = vmax.f32 %v454_v8, %v460_v18  ;;  %v466_v22 = vmax.f32 %v450_v12, %v462_v19  ;;  %v469_v23 = vsel %vm328_vm5, %v467_v14, %v468_v16  ;;  %v471_v24 = vsel %vm328_vm5, %v468_v16, %v470_v15 }
  0x22   : > { %v474_v25 = vmax.f32 %v465_v21, %v469_v23  ;;  %v475_v26 = vmax.f32 %v466_v22, %v471_v24 }
  0x24   : > { %v476_v27 = vpack.c.bf16 %v475_v26, %v474_v25 }
  0x26   : > { %682 = vmatmul.mubr.msk.bf16.vlgmr.msra.gmra.mrb[4].mxu0 %vm255_vm2, %v476_v27  ;;  %v646_v27 = vld [vmem:[%s1034_s4] ss:$0 sm:$0xff] }
  0xef   : > { %v297_v29 = vpop.f32.mrb[0].mxu0 }
  0xf0   : > { %v306_v30 = vrot.slane %v297_v29, 6  ;;  %v667_v31 = vpop.f32.mrb[1].mxu0  ;;  %v647_v29 = vld [vmem:[%s1035_s5] ss:$0 sm:$0xff] }
  0xf1   : > { %v300_v32 = vpop.f32.mrb[2].mxu0 }
  0xf2   : > { %v939_v33 = vsel %vm259_vm0, 0.0, %v306_v30  ;;  %v307_v34 = vrot.slane %v300_v32, 6  ;;  %v668_v35 = vpop.f32.mrb[3].mxu0 }
  0xf3   : > { %v341_v39 = vrot.slane %v939_v33, 3  ;;  %v317_v40 = vrot.slane %v939_v33, 1  ;;  %v329_v50 = vrot.slane %v939_v33, 2  ;;  %v353_v51 = vrot.slane %v939_v33, 4 }
  0xf4   : > { %v308_v37 = vsel %vm259_vm0, %v306_v30, %v307_v34  ;;  %v313_v38 = vsel %vm259_vm0, %v307_v34, 0.0 }
  0xf5   : > { %v320_v41 = vrot.slane %v313_v38, 1  ;;  %v332_v42 = vrot.slane %v313_v38, 2  ;;  %v344_v43 = vrot.slane %v313_v38, 3  ;;  %v356_v44 = vrot.slane %v313_v38, 4 }
  0xf6   : > { %v342_v46 = vrot.slane %v308_v37, 3  ;;  %v318_v47 = vrot.slane %v308_v37, 1  ;;  %v354_v48 = vrot.slane %v308_v37, 4  ;;  %v330_v49 = vrot.slane %v308_v37, 2 }
  0xf8   : > { %v343_v53 = vsel %vm340_vm6, %v341_v39, %v342_v46  ;;  %v345_v54 = vsel %vm340_vm6, %v342_v46, %v344_v43  ;;  %v319_v55 = vsel %vm316_vm4, %v317_v40, %v318_v47  ;;  %v321_v56 = vsel %vm316_vm4, %v318_v47, %v320_v41 }
  0xf9   : > { %v741_v57 = vpack.i.bf16 %v345_v54, %v343_v53  ;;  %v731_v58 = vpack.i.bf16 %v321_v56, %v319_v55  ;;  %v355_v59 = vsel %vm352_vm7, %v353_v51, %v354_v48  ;;  %v357_v60 = vsel %vm352_vm7, %v354_v48, %v356_v44  ;;  %v518_v1 = vpop.f32.mrb[4].mxu0 }
  0xfa   : > { %v331_v61 = vsel %vm328_vm5, %v329_v50, %v330_v49  ;;  %v333_v62 = vsel %vm328_vm5, %v330_v49, %v332_v42  ;;  %v746_v63 = vpack.i.bf16 %v357_v60, %v355_v59  ;;  %v683_v2 = vpop.f32.mrb[5].mxu0 }
  0xfb   : > { %742 = vrot.lane.b32.xlu1 %v741_v57, %s820_s9  ;;  %732 = vrot.lane.b32.xlu0 %v731_v58, %s821_s10  ;;  %v736_v0 = vpack.i.bf16 %v333_v62, %v331_v61  ;;  %v521_v3 = vpop.f32.mrb[6].mxu0  ;;  %s982_s9 = scalar_lea.hbm %s1036_s6, %s654_s19 }
  0xfc   : > { %v684_v4 = vpop.f32.mrb[7].mxu0 }
  0xff   : > { %747 = vrot.lane.b32.xlu1 %v746_v63, %s822_s11  ;;  %737 = vrot.lane.b32.xlu0 %v736_v0, %s823_s12  ;;  %s754_s11 = scalar_lea.vmem %s985_s26, 256 }
 0x100   : > { %p755_p11 = scmp.ne.s32.totalorder %s985_s26, %s754_s11 }
 0x102   : > { %p756_p12 = pnand %p755_p11, %p899_p5 }
 0x103   : > { %527 = vrot.lane.b32.xlu0 %v518_v1, %s823_s12  ;;  %529 = vrot.lane.b32.xlu1 %v521_v3, %s823_s12  ;;  %s824_s12 = smov [#allocation2]  }
 0x104   : > { %p757_p13 = pneg %p756_p12  ;;  %s758_s14 = sshll.u32 %s824_s12, 4  ;;  %s759_s14 = int_to_ptr.vmem [resolvable:$false] %s758_s14 }
 0x105   : > { %s760_s15 = scalar_lea.vmem %s759_s14, 512  ;;  %p761_p0 = scmp.lt.s32.totalorder %s985_s26, %s759_s14 }
 0x106   : > { %p762_p1 = scmp.lt.s32.totalorder %s760_s15, %s754_s11 }
 0x108   : > { %p763_p2 = por %p762_p1, %p761_p0 }
 0x10a   : > { %p764_p3 = pnand %p763_p2, %p757_p13 }
 0x16d   : > { %v743_v5 = vpop.permute.xlu1 %742  ;;  %v733_v6 = vpop.permute.xlu0 %732 }
 0x16e   : > { %v735_v7 = vunpack.i.h.bf16 %v733_v6  ;;  %v734_v8 = vunpack.i.l.bf16 %v733_v6  ;;  %v745_v13 = vunpack.i.h.bf16 %v743_v5  ;;  %v744_v14 = vunpack.i.l.bf16 %v743_v5 }
 0x170   : > { %v366_v15 = vsel %vm364_vm8, %v308_v37, %v735_v7  ;;  %v365_v16 = vsel %vm364_vm8, %v939_v33, %v734_v8 }
 0x171   : > { %v748_v9 = vpop.permute.xlu1 %747  ;;  %v738_v10 = vpop.permute.xlu0 %737 }
 0x172   : > { %v740_v11 = vunpack.i.h.bf16 %v738_v10  ;;  %v739_v12 = vunpack.i.l.bf16 %v738_v10  ;;  %v750_v17 = vunpack.i.h.bf16 %v748_v9  ;;  %v749_v18 = vunpack.i.l.bf16 %v748_v9 }
 0x174   : > { %v368_v19 = vsel %vm367_vm9, %v365_v16, %v739_v12  ;;  %v369_v20 = vsel %vm367_vm9, %v366_v15, %v740_v11 }
 0x175   : > { %v371_v21 = vsel %vm370_vm10, %v368_v19, %v744_v14  ;;  %v372_v22 = vsel %vm370_vm10, %v369_v20, %v745_v13  ;;  %v528_v26 = vpop.permute.xlu0 %527  ;;  %v530_v33 = vpop.permute.xlu1 %529 }
 0x176   : > { %v374_v23 = vsel %vm373_vm11, %v371_v21, %v749_v18  ;;  %v375_v24 = vsel %vm373_vm11, %v372_v22, %v750_v17 }
 0x177   : > { %v376_v25 = vpack.c.bf16 %v375_v24, %v374_v23 }
 0x179   : > { %676 = vmatmul.mubr.msk.bf16.vlgmr.msra.gmra.mrb[0].mxu1 %vm397_vm12, %v376_v25 }
 0x24c   : > { %v438_v28 = vpop.f32.mrb[0].mxu1 }
 0x24d   : > { %v533_v30 = vsel %vm367_vm9, %v438_v28, %v528_v26  ;;  %v677_v31 = vpop.f32.mrb[1].mxu1 }
 0x24e   : > { %v542_v32 = vmul.f32 %v646_v27, %v533_v30  ;;  %v441_v34 = vpop.f32.mrb[2].mxu1 }
 0x24f   : > { %v534_v35 = vsel %vm367_vm9, %v441_v34, %v530_v33  ;;  %v678_v36 = vpop.f32.mrb[3].mxu1 }
 0x250   : > { %v551_v37 = vadd.f32 %v647_v29, %v542_v32  ;;  %v543_v38 = vmul.f32 %v646_v27, %v534_v35 }
 0x252   : > { %v553_v39 = vmax.f32 %v551_v37, 0.0  ;;  %v552_v40 = vadd.f32 %v647_v29, %v543_v38 }
 0x254   : > { %555 = vst.msk [vmem:[%s244_s20] sm:$0xff] %vm370_vm10, %v553_v39  ;;  %v554_v41 = vmax.f32 %v552_v40, 0.0 }
 0x256   : > { %556 = vst.msk [vmem:[%s244_s20 + $0x8] sm:$0xff] %vm370_vm10, %v554_v41 }
 0x257   : > { %767 = shalt.err (!%p764_p3)
}
 0x258   : > { %s768_s13 = scalar_lea.hbm %s982_s9, 256  ;;  %s772_s18 = scalar_lea.hbm %s1036_s6, 512 }
 0x259   : > { %p769_p4 = scmp.ne.s32.totalorder %s982_s9, %s768_s13  ;;  %p773_p9 = scmp.lt.u32.totalorder %s982_s9, %s1036_s6 }
 0x25a   : > { %p774_p10 = scmp.lt.u32.totalorder %s772_s18, %s768_s13  ;;  %p776_p12 = scmp.lt.u32.totalorder %s768_s13, %s982_s9 }
 0x25b   : > { %p770_p7 = pnand %p769_p4, %p899_p5 }
 0x25c   : > { %p775_p11 = por %p774_p10, %p773_p9 }
 0x25d   : > { %p771_p8 = pneg %p770_p7 }
 0x25e   : > { %p777_p13 = por %p776_p12, %p775_p11 }
 0x260   : > { %p778_p0 = pnand %p777_p13, %p771_p8 }
 0x262   : > { %781 = shalt.err (!%p778_p0)
}
 0x263   : > { %s825_s28 = smov 128  }
 0x264   : > { %685 = dma.vmem_to_hbm [thread:$0]  (%p899_p5), %s985_s26, 256, %s982_s9, %s988_s25, %s825_s28, %s825_s28, %s821_s10  }
 0x265 PF: > { %p691_p1 = scmp.ge.s32.totalorder %s816_s24, 2  ;;  %s586_s29 = sand.u32 1, %s804_s21  }
 0x266   : > { %s587_s11 = scalar_lea.sflag [#allocation3], %s586_s29 }
 0x267   : > { %p688_p2 = pnand %p691_p1, %p903_p6 }
 0x269   : > { %799 = dma.done.wait (!%p688_p2), %s587_s11, 256  }
 0x26a   : > { %801 = vsyncadd (!%p688_p2), %s587_s11, 4294967040  ;;  %p16_p3 = scmp.ge.s32.totalorder %s886_s27, 4   ;;  %s1039_s21 = smov %s808_s22 }
 0x26b   : > { %s1040_s22 = smov %s812_s23  ;;  %s1041_s23 = smov %s897_s30 }
 0x26c   : > { %s1042_s24 = smov %s886_s27  ;;  %18 = sbr.rel (!%p16_p3) target bundleno = 3 (0x3), region = 79 }
 0x273   :  { %592 = vsyncpa [#allocation3], 1 }
 0x274   :  { %594 = vsyncpa [#allocation3 + $0x1], 1 }

</bundles_post_ra>
